<compile_context>
chip_gen: v7x
topology: tpu7x:2x2x1
jax: 0.10.0
libtpu: 0.0.40
codegen_flags: <defaults>
</compile_context>

<pallas_src>
import jax
import jax.numpy as jnp
from jax.experimental import pallas as pl
from jax.experimental.pallas import tpu as pltpu


def _round_up(x, m):
    return (x + m - 1) // m * m


def _mlp_dropout_kernel(x_ref, mask_ref, w1_ref, b1_ref, w2_ref, b2_ref, o_ref):
    # fc1 on the MXU: bf16 operands, f32 accumulation.
    h = jnp.dot(x_ref[...], w1_ref[...], preferred_element_type=jnp.float32)
    # bias + ReLU in f32 on the VPU.
    h = jnp.maximum(h + b1_ref[...], 0.0)
    # Inverted dropout: keep-scale is folded into w2 in the wrapper, so this is a 0/1 multiply.
    h = h * mask_ref[...]
    # fc2: cast to bf16 only at the dot boundary, accumulate in f32.
    out = jnp.dot(h.astype(w2_ref.dtype), w2_ref[...], preferred_element_type=jnp.float32)
    o_ref[...] = (out + b2_ref[...]).astype(o_ref.dtype)


def prepare_params(w1, b1, w2, b2, dropout_prob):
    """One-time host-side prep: transpose to [in, out], pad to (8,128)-friendly /
    lane-dense shapes, fold the dropout keep-scale into w2, cast matmul operands to bf16."""
    H, Din = w1.shape
    Dout = w2.shape[0]
    Din_p = _round_up(Din, 128)
    H_p = _round_up(H, 128)
    Dout_p = _round_up(Dout, 128)

    p = float(dropout_prob)
    keep_scale = 1.0 / (1.0 - p) if p < 1.0 else 1.0

    w1t = jnp.zeros((Din_p, H_p), jnp.float32).at[:Din, :H].set(
        jnp.asarray(w1, jnp.float32).T)
    w2t = jnp.zeros((H_p, Dout_p), jnp.float32).at[:H, :Dout].set(
        jnp.asarray(w2, jnp.float32).T * keep_scale)
    b1r = jnp.zeros((1, H_p), jnp.float32).at[0, :H].set(jnp.asarray(b1, jnp.float32))
    b2r = jnp.zeros((1, Dout_p), jnp.float32).at[0, :Dout].set(jnp.asarray(b2, jnp.float32))

    return dict(
        w1t=w1t.astype(jnp.bfloat16),
        w2t=w2t.astype(jnp.bfloat16),
        b1=b1r,
        b2=b2r,
        dims=(Din, H, Dout),
        padded=(Din_p, H_p, Dout_p),
        p=p,
    )


def dropout_two_layer_nn(params, x, rng_key):
    """x: [B, Din] f32. Returns (out [B, Dout] f32, keep_mask [B, H] f32 of 0/1)."""
    B, Din = x.shape
    Din_p, H_p, Dout_p = params["padded"]
    _, H, Dout = params["dims"]
    p = params["p"]

    # Batch tile: multiple of 16 rows (bf16 sublane packing), capped so the live f32
    # intermediate (tile_b x H_p) stays within ~32 vregs, and capped at 512 rows.
    cap = max(16, ((32 * 1024) // H_p) // 16 * 16)
    tile_b = max(16, min(_round_up(B, 16), cap, 512))
    B_p = _round_up(B, tile_b)
    grid = (B_p // tile_b,)

    x_p = (jnp.zeros((B_p, Din_p), jnp.float32)
           .at[:B, :Din].set(jnp.asarray(x, jnp.float32))
           .astype(jnp.bfloat16))

    # Dropout keep-mask (0/1, f32) generated host-side; per-row randomness (no tile correlation).
    if p <= 0.0:
        mask = jnp.ones((B_p, H_p), jnp.float32)
    elif p >= 1.0:
        mask = jnp.zeros((B_p, H_p), jnp.float32)
    else:
        mask = jax.random.bernoulli(rng_key, 1.0 - p, (B_p, H_p)).astype(jnp.float32)

    # VMEM budget: resident weights/biases + double-buffered per-tile arrays (bytes).
    resident = (Din_p * H_p + H_p * Dout_p) * 2 + (H_p + Dout_p) * 4
    per_tile = tile_b * (Din_p * 2 + H_p * 4 + Dout_p * 4)
    vmem_bytes = int(min(max(2 * (resident + 2 * per_tile), 4 << 20), 32 << 20))

    out = pl.pallas_call(
        _mlp_dropout_kernel,
        out_shape=jax.ShapeDtypeStruct((B_p, Dout_p), jnp.float32),
        grid=grid,
        in_specs=[
            pl.BlockSpec((tile_b, Din_p), lambda i: (i, 0)),    # x tile (streamed)
            pl.BlockSpec((tile_b, H_p), lambda i: (i, 0)),      # dropout mask tile (streamed)
            pl.BlockSpec((Din_p, H_p), lambda i: (0, 0)),       # w1^T (resident)
            pl.BlockSpec((1, H_p), lambda i: (0, 0)),           # b1 (resident)
            pl.BlockSpec((H_p, Dout_p), lambda i: (0, 0)),      # w2^T * keep_scale (resident)
            pl.BlockSpec((1, Dout_p), lambda i: (0, 0)),        # b2 (resident)
        ],
        out_specs=pl.BlockSpec((tile_b, Dout_p), lambda i: (i, 0)),
        compiler_params=pltpu.CompilerParams(
            dimension_semantics=("parallel",),
            vmem_limit_bytes=vmem_bytes,
        ),
    )(x_p, mask, params["w1t"], params["b1"], params["w2t"], params["b2"])

    return out[:B, :Dout], mask[:B, :H]


if __name__ == "__main__":
    # Small shapes consistent with fc1 -> relu -> dropout -> fc2 on a [batch, features] input.
    B, Din, H, Dout = 8, 32, 64, 16
    p = 0.5

    key = jax.random.PRNGKey(0)
    kx, k1, k2, k3, k4, kdrop = jax.random.split(key, 6)

    x = jax.random.normal(kx, (B, Din), dtype=jnp.float32)
    # torch.nn.Linear layout: weight [out, in], bias [out].
    w1 = jax.random.normal(k1, (H, Din), dtype=jnp.float32) * (1.0 / jnp.sqrt(Din))
    b1 = jax.random.normal(k2, (H,), dtype=jnp.float32) * 0.01
    w2 = jax.random.normal(k3, (Dout, H), dtype=jnp.float32) * (1.0 / jnp.sqrt(H))
    b2 = jax.random.normal(k4, (Dout,), dtype=jnp.float32) * 0.01

    params = prepare_params(w1, b1, w2, b2, dropout_prob=p)
    out, keep_mask = dropout_two_layer_nn(params, x, kdrop)
    out = jax.block_until_ready(out)

    assert out.shape == (B, Dout), out.shape

    # Loose numerical check against a pure-JAX f32 reference using the same mask
    # (bf16 matmul operands -> generous tolerance).
    keep_scale = 1.0 / (1.0 - p)
    h_ref = jnp.maximum(x @ w1.T + b1, 0.0) * keep_mask * keep_scale
    ref = h_ref @ w2.T + b2
    err = float(jnp.max(jnp.abs(out - ref)))
    scale = float(jnp.max(jnp.abs(ref))) + 1e-6
    assert err <= 0.05 * scale + 1e-3, (err, scale)

    print("KERNEL_OK")
</pallas_src>

<mosaic_0001>
module attributes {stable_mosaic.version = 11 : i64} {
  func.func @_mlp_dropout_kernel(%arg0: i32, %arg1: memref<16x128xbf16, #tpu.memory_space<vmem>>, %arg2: memref<16x128xf32, #tpu.memory_space<vmem>>, %arg3: memref<128x128xbf16, #tpu.memory_space<vmem>>, %arg4: memref<1x128xf32, #tpu.memory_space<vmem>>, %arg5: memref<128x128xbf16, #tpu.memory_space<vmem>>, %arg6: memref<1x128xf32, #tpu.memory_space<vmem>>, %arg7: memref<16x128xf32, #tpu.memory_space<vmem>>) attributes {dimension_semantics = [#tpu.dimension_semantics<parallel>], iteration_bounds = array<i64: 1>, scalar_prefetch = 0 : i64, scratch_operands = 0 : i64, tpu.core_type = #tpu.core_type<tc>, window_params = [{transform_indices = @transform_0, window_bounds = array<i64: 16, 128>}, {transform_indices = @transform_1, window_bounds = array<i64: 16, 128>}, {pipeline_mode = #tpu.pipeline_mode<synchronous>, transform_indices = @transform_2, window_bounds = array<i64: 128, 128>}, {pipeline_mode = #tpu.pipeline_mode<synchronous>, transform_indices = @transform_3, window_bounds = array<i64: 1, 128>}, {pipeline_mode = #tpu.pipeline_mode<synchronous>, transform_indices = @transform_4, window_bounds = array<i64: 128, 128>}, {pipeline_mode = #tpu.pipeline_mode<synchronous>, transform_indices = @transform_5, window_bounds = array<i64: 1, 128>}, {transform_indices = @transform_6, window_bounds = array<i64: 16, 128>}]} {
    %c0 = arith.constant 0 : index
    %c0_0 = arith.constant 0 : index
    %0 = vector.load %arg1[%c0, %c0_0] : memref<16x128xbf16, #tpu.memory_space<vmem>>, vector<16x128xbf16>
    %c0_1 = arith.constant 0 : index
    %c0_2 = arith.constant 0 : index
    %1 = vector.load %arg3[%c0_1, %c0_2] : memref<128x128xbf16, #tpu.memory_space<vmem>>, vector<128x128xbf16>
    %cst = arith.constant dense<0.000000e+00> : vector<16x128xf32>
    %2 = tpu.matmul %0, %1, %cst {dimension_numbers = #tpu.dot_dimension_numbers<[1], [0], [0], [1], [0, 0, 1, 1], [], []>} : vector<16x128xbf16>, vector<128x128xbf16>, vector<16x128xf32> -> vector<16x128xf32>
    %c0_3 = arith.constant 0 : index
    %c0_4 = arith.constant 0 : index
    %3 = vector.load %arg4[%c0_3, %c0_4] : memref<1x128xf32, #tpu.memory_space<vmem>>, vector<1x128xf32>
    %4 = vector.broadcast %3 : vector<1x128xf32> to vector<16x128xf32>
    %5 = arith.addf %2, %4 : vector<16x128xf32>
    %cst_5 = arith.constant 0.000000e+00 : f32
    %6 = vector.broadcast %cst_5 : f32 to vector<16x128xf32>
    %7 = arith.maximumf %5, %6 : vector<16x128xf32>
    %c0_6 = arith.constant 0 : index
    %c0_7 = arith.constant 0 : index
    %8 = vector.load %arg2[%c0_6, %c0_7] : memref<16x128xf32, #tpu.memory_space<vmem>>, vector<16x128xf32>
    %9 = arith.mulf %7, %8 : vector<16x128xf32>
    %10 = arith.truncf %9 : vector<16x128xf32> to vector<16x128xbf16>
    %c0_8 = arith.constant 0 : index
    %c0_9 = arith.constant 0 : index
    %11 = vector.load %arg5[%c0_8, %c0_9] : memref<128x128xbf16, #tpu.memory_space<vmem>>, vector<128x128xbf16>
    %cst_10 = arith.constant dense<0.000000e+00> : vector<16x128xf32>
    %12 = tpu.matmul %10, %11, %cst_10 {dimension_numbers = #tpu.dot_dimension_numbers<[1], [0], [0], [1], [0, 0, 1, 1], [], []>} : vector<16x128xbf16>, vector<128x128xbf16>, vector<16x128xf32> -> vector<16x128xf32>
    %c0_11 = arith.constant 0 : index
    %c0_12 = arith.constant 0 : index
    %13 = vector.load %arg6[%c0_11, %c0_12] : memref<1x128xf32, #tpu.memory_space<vmem>>, vector<1x128xf32>
    %14 = vector.broadcast %13 : vector<1x128xf32> to vector<16x128xf32>
    %15 = arith.addf %12, %14 : vector<16x128xf32>
    %c0_13 = arith.constant 0 : index
    %c0_14 = arith.constant 0 : index
    %16 = vector.load %arg7[%c0_13, %c0_14] : memref<16x128xf32, #tpu.memory_space<vmem>>, vector<16x128xf32>
    tpu.vector_store %arg7[%c0_13, %c0_14], %15 {strides = array<i32>} : memref<16x128xf32, #tpu.memory_space<vmem>>, vector<16x128xf32>,
    return
  }
  func.func @transform_0(%arg0: i32) -> (i32, i32) {
    %c0_i32 = arith.constant 0 : i32
    %c0_i32_0 = arith.constant 0 : i32
    return %arg0, %c0_i32 : i32, i32
  }
  func.func @transform_1(%arg0: i32) -> (i32, i32) {
    %c0_i32 = arith.constant 0 : i32
    %c0_i32_0 = arith.constant 0 : i32
    return %arg0, %c0_i32 : i32, i32
  }
  func.func @transform_2(%arg0: i32) -> (i32, i32) {
    %c0_i32 = arith.constant 0 : i32
    %c0_i32_0 = arith.constant 0 : i32
    %c0_i32_1 = arith.constant 0 : i32
    return %c0_i32, %c0_i32_0 : i32, i32
  }
  func.func @transform_3(%arg0: i32) -> (i32, i32) {
    %c0_i32 = arith.constant 0 : i32
    %c0_i32_0 = arith.constant 0 : i32
    %c0_i32_1 = arith.constant 0 : i32
    return %c0_i32, %c0_i32_0 : i32, i32
  }
  func.func @transform_4(%arg0: i32) -> (i32, i32) {
    %c0_i32 = arith.constant 0 : i32
    %c0_i32_0 = arith.constant 0 : i32
    %c0_i32_1 = arith.constant 0 : i32
    return %c0_i32, %c0_i32_0 : i32, i32
  }
  func.func @transform_5(%arg0: i32) -> (i32, i32) {
    %c0_i32 = arith.constant 0 : i32
    %c0_i32_0 = arith.constant 0 : i32
    %c0_i32_1 = arith.constant 0 : i32
    return %c0_i32, %c0_i32_0 : i32, i32
  }
  func.func @transform_6(%arg0: i32) -> (i32, i32) {
    %c0_i32 = arith.constant 0 : i32
    %c0_i32_0 = arith.constant 0 : i32
    return %arg0, %c0_i32 : i32, i32
  }
}

</mosaic_0001>

<bundles_post_ra>
// kernel: tpu_custom_call.1
= control target key start
LH: loop header
LB: loop body
LE: loop exit
PB: predicated region body
PF: predicated region fallthrough
CT: control target
= control target key end

     0   :  { %11 = vsyncpa [#allocation3], 0  ;;  %s697_s0 = inlined_call_operand.hbm [shape: bf16[16,128], index: 0, kind: input, shape index: {}]   ;;  %s698_s1 = inlined_call_operand.hbm [shape: f32[16,128], index: 1, kind: input, shape index: {}]   ;;  %s699_s2 = inlined_call_operand.hbm [shape: bf16[128,128], index: 2, kind: input, shape index: {}]   ;;  %s700_s3 = inlined_call_operand.vmem [shape: f32[1,128], index: 3, kind: input, shape index: {}]   ;;  %s701_s4 = inlined_call_operand.hbm [shape: bf16[128,128], index: 4, kind: input, shape index: {}]   ;;  %s702_s5 = inlined_call_operand.vmem [shape: f32[1,128], index: 5, kind: input, shape index: {}]   ;;  %s703_s6 = inlined_call_operand.hbm [shape: f32[16,128], index: 6, kind: output, shape index: {}]  }
   0x1   :  { %12 = vsyncpa [#allocation6], 0 }
   0x2   :  { %13 = vsyncpa [#allocation9], 0 }
   0x3   :  { %14 = vsyncpa [#allocation4], 0  ;;  %s563_s21 = smov [#allocation5]   ;;  %s445_s25 = scalar_lea.hbm %s698_s1, 256 }
   0x4   :  { %s32_s22 = sshll.u32 %s563_s21, 4  ;;  %p446_p0 = scmp.ne.s32.totalorder %s698_s1, %s445_s25  ;;  %s33_s22 = int_to_ptr.vmem [resolvable:$true] %s32_s22 }
   0x5   :  { %p449_p1 = scmp.lt.u32.totalorder %s445_s25, %s698_s1 }
   0x7   :  { %p451_p2 = pnand %p449_p1, %p446_p0 }
   0x9   :  { %454 = shalt.err (!%p451_p2)
}
   0xa   :  { %s455_s30 = scalar_lea.vmem %s33_s22, 256  ;;  %p460_p4 = scmp.lt.s32.totalorder %s33_s22, %s33_s22 }
   0xb   :  { %p456_p3 = scmp.ne.s32.totalorder %s33_s22, %s455_s30  ;;  %p461_p5 = scmp.lt.s32.totalorder %s455_s30, %s455_s30 }
   0xd   :  { %p462_p6 = por %p461_p5, %p460_p4 }
   0xf   :  { %p463_p7 = pnand %p462_p6, %p456_p3 }
  0x11   :  { %466 = shalt.err (!%p463_p7)
}
  0x12   :  { %s564_s7 = smov 128   ;;  %s565_s8 = smov 8  }
  0x13   :  { %38 = dma.hbm_to_vmem [thread:$0]  %s698_s1, 256, %s33_s22, [#allocation6], %s564_s7, %s564_s7, %s565_s8  }
  0x14   :  { %s566_s11 = smov [#allocation2]   ;;  %s467_s15 = scalar_lea.hbm %s697_s0, 128 }
  0x15   :  { %s20_s12 = sshll.u32 %s566_s11, 4  ;;  %p468_p8 = scmp.ne.s32.totalorder %s697_s0, %s467_s15  ;;  %s21_s12 = int_to_ptr.vmem [resolvable:$true] %s20_s12 }
  0x16   :  { %p471_p9 = scmp.lt.u32.totalorder %s467_s15, %s697_s0 }
  0x18   :  { %p473_p10 = pnand %p471_p9, %p468_p8 }
  0x1a   :  { %476 = shalt.err (!%p473_p10)
}
  0x1b   :  { %s477_s20 = scalar_lea.vmem %s21_s12, 128  ;;  %p482_p12 = scmp.lt.s32.totalorder %s21_s12, %s21_s12 }
  0x1c   :  { %p478_p11 = scmp.ne.s32.totalorder %s21_s12, %s477_s20  ;;  %p483_p13 = scmp.lt.s32.totalorder %s477_s20, %s477_s20 }
  0x1e   :  { %p484_p0 = por %p483_p13, %p482_p12 }
  0x20   :  { %p485_p1 = pnand %p484_p0, %p478_p11 }
  0x22   :  { %488 = shalt.err (!%p485_p1)
}
  0x23   :  { %s567_s1 = smov 64   ;;  %s568_s21 = smov 4  }
  0x24   :  { %26 = dma.hbm_to_vmem [thread:$0]  %s697_s0, 128, %s21_s12, [#allocation3], %s567_s1, %s567_s1, %s568_s21  }
  0x25   :  { %s569_s24 = smov [#allocation7]   ;;  %s570_s26 = smov [#allocation8]  }
  0x26   :  { %s44_s25 = sshll.u32 %s569_s24, 4  ;;  %s58_s27 = sshll.u32 %s570_s26, 4  ;;  %s45_s25 = int_to_ptr.vmem [resolvable:$true] %s44_s25  ;;  %s639_s27 = int_to_ptr.vmem [resolvable:$true] %s58_s27 }
  0x27   :  { %s489_s30 = scalar_lea.hbm %s699_s2, 1024 }
  0x28   :  { %p490_p2 = scmp.ne.s32.totalorder %s699_s2, %s489_s30  ;;  %p493_p3 = scmp.lt.u32.totalorder %s489_s30, %s699_s2 }
  0x2a   :  { %p495_p4 = pnand %p493_p3, %p490_p2 }
  0x2c   :  { %498 = shalt.err (!%p495_p4)
}
  0x2d   :  { %s499_s0 = scalar_lea.vmem %s45_s25, 1024  ;;  %p504_p6 = scmp.lt.s32.totalorder %s45_s25, %s45_s25 }
  0x2e   :  { %p500_p5 = scmp.ne.s32.totalorder %s45_s25, %s499_s0  ;;  %p505_p7 = scmp.lt.s32.totalorder %s499_s0, %s499_s0 }
  0x30   :  { %p506_p8 = por %p505_p7, %p504_p6 }
  0x32   :  { %p507_p9 = pnand %p506_p8, %p500_p5 }
  0x34   :  { %510 = shalt.err (!%p507_p9)
}
  0x35   :  { %50 = dma.hbm_to_vmem [thread:$0]  %s699_s2, 1024, %s45_s25, [#allocation6], %s567_s1, %s567_s1, %s568_s21  }
  0x36   :  { %s511_s17 = scalar_lea.hbm %s701_s4, 1024 }
  0x37   :  { %p512_p10 = scmp.ne.s32.totalorder %s701_s4, %s511_s17  ;;  %p515_p11 = scmp.lt.u32.totalorder %s511_s17, %s701_s4 }
  0x39   :  { %p517_p12 = pnand %p515_p11, %p512_p10 }
  0x3b   :  { %520 = shalt.err (!%p517_p12)
}
  0x3c   :  { %s521_s23 = scalar_lea.vmem %s639_s27, 1024  ;;  %p526_p0 = scmp.lt.s32.totalorder %s639_s27, %s639_s27 }
  0x3d   :  { %p522_p13 = scmp.ne.s32.totalorder %s639_s27, %s521_s23  ;;  %p527_p1 = scmp.lt.s32.totalorder %s521_s23, %s521_s23 }
  0x3f   :  { %p528_p2 = por %p527_p1, %p526_p0 }
  0x41   :  { %p529_p3 = pnand %p528_p2, %p522_p13 }
  0x43   :  { %532 = shalt.err (!%p529_p3)
}
  0x44   :  { %64 = dma.hbm_to_vmem [thread:$0]  %s701_s4, 1024, %s639_s27, [#allocation9], %s567_s1, %s567_s1, %s568_s21  }
  0x45   :  { %555 = dma.done.wait [#allocation3], 128  }
  0x46   :  { %556 = vsyncadd [#allocation3], 4294967168 }
  0x47   :  { %557 = dma.done.wait [#allocation6], 1280  }
  0x48   :  { %558 = vsyncadd [#allocation6], 4294966016 }
  0x49   :  { %559 = dma.done.wait [#allocation9], 1024  }
  0x4a   :  { %560 = vsyncadd [#allocation9], 4294966272  ;;  %v571_v0 = vmov 0.0   ;;  %vm572_vm0 = vmmov 0   ;;  %v428_v1 = vld [vmem:[#allocation7] sm:$0xff]   ;;  %v429_v2 = vld [vmem:[#allocation7 + $0x8] sm:$0xff]  }
  0x4b   :  { %377 = vmatprep.subr.bf16.mxu0 %v571_v0  ;;  %393 = vmatprep.mubr.msk.bf16.mxu0 %vm572_vm0, %v571_v0  ;;  %v430_v3 = vld [vmem:[#allocation7 + $0x10] sm:$0xff]   ;;  %v437_v4 = vld [vmem:[#allocation8] sm:$0xff]   ;;  %v431_v5 = vld [vmem:[#allocation7 + $0x18] sm:$0xff]  }
  0x4c   :  { %397 = vmatprep.subr.bf16.mxu1 %v571_v0  ;;  %413 = vmatprep.mubr.msk.bf16.mxu1 %vm572_vm0, %v571_v0  ;;  %v438_v6 = vld [vmem:[#allocation8 + $0x8] sm:$0xff]   ;;  %v432_v7 = vld [vmem:[#allocation7 + $0x20] sm:$0xff]   ;;  %v439_v8 = vld [vmem:[#allocation8 + $0x10] sm:$0xff]  }
  0x4d   :  { %378 = vmatpush3.bf16.msra.mxu0 %v428_v1  ;;  %398 = vmatpush3.bf16.msra.mxu1 %v437_v4  ;;  %v433_v9 = vld [vmem:[#allocation7 + $0x28] sm:$0xff]   ;;  %v440_v10 = vld [vmem:[#allocation8 + $0x18] sm:$0xff]   ;;  %v434_v11 = vld [vmem:[#allocation7 + $0x30] sm:$0xff]  }
  0x4e   :  { %379 = vmatprep.subr.bf16.mxu0 %v571_v0  ;;  %399 = vmatprep.subr.bf16.mxu1 %v571_v0  ;;  %v441_v12 = vld [vmem:[#allocation8 + $0x20] sm:$0xff]   ;;  %v435_v13 = vld [vmem:[#allocation7 + $0x38] sm:$0xff]   ;;  %v436_v14 = vld [vmem:[#allocation2] sm:$0xff]  }
  0x4f   :  { %v442_v15 = vld [vmem:[#allocation8 + $0x28] sm:$0xff]   ;;  %v443_v16 = vld [vmem:[#allocation8 + $0x30] sm:$0xff]   ;;  %v444_v17 = vld [vmem:[#allocation8 + $0x38] sm:$0xff]  }
  0x50   :  { %v340_v18 = vld [vmem:[%s700_s3] ss:$0 sm:$0xff]  ;;  %v202_v26 = vld [vmem:[#allocation5] sm:$0xff]  ;;  %v203_v27 = vld [vmem:[#allocation5 + $0x8] sm:$0xff]  ;;  %s573_s3 = smov [#allocation10]  }
  0x51   :  { %380 = vmatpush3.bf16.msra.mxu0 %v429_v2  ;;  %400 = vmatpush3.bf16.msra.mxu1 %v438_v6  ;;  %v350_v32 = vld [vmem:[%s702_s5] ss:$0 sm:$0xff]  ;;  %s326_s26 = sshll.u32 %s573_s3, 4  ;;  %s327_s26 = int_to_ptr.vmem [resolvable:$true] %s326_s26 }
  0x52   :  { %381 = vmatprep.subr.bf16.mxu0 %v571_v0  ;;  %401 = vmatprep.subr.bf16.mxu1 %v571_v0  ;;  %s533_s27 = scalar_lea.vmem %s327_s26, 256  ;;  %p538_p5 = scmp.lt.s32.totalorder %s327_s26, %s327_s26 }
  0x53   :  { %p534_p4 = scmp.ne.s32.totalorder %s327_s26, %s533_s27  ;;  %p539_p6 = scmp.lt.s32.totalorder %s533_s27, %s533_s27 }
  0x55   :  { %382 = vmatpush3.bf16.msra.mxu0 %v430_v3  ;;  %402 = vmatpush3.bf16.msra.mxu1 %v439_v8  ;;  %p540_p7 = por %p539_p6, %p538_p5 }
  0x56   :  { %383 = vmatprep.subr.bf16.mxu0 %v571_v0  ;;  %403 = vmatprep.subr.bf16.mxu1 %v571_v0 }
  0x57   :  { %p541_p8 = pnand %p540_p7, %p534_p4 }
  0x59   :  { %384 = vmatpush3.bf16.msra.mxu0 %v431_v5  ;;  %404 = vmatpush3.bf16.msra.mxu1 %v440_v10 }
  0x5a   :  { %385 = vmatprep.subr.bf16.mxu0 %v571_v0  ;;  %405 = vmatprep.subr.bf16.mxu1 %v571_v0 }
  0x5d   :  { %386 = vmatpush3.bf16.msra.mxu0 %v432_v7  ;;  %406 = vmatpush3.bf16.msra.mxu1 %v441_v12 }
  0x5e   :  { %387 = vmatprep.subr.bf16.mxu0 %v571_v0  ;;  %407 = vmatprep.subr.bf16.mxu1 %v571_v0 }
  0x61   :  { %388 = vmatpush3.bf16.msra.mxu0 %v433_v9  ;;  %408 = vmatpush3.bf16.msra.mxu1 %v442_v15 }
  0x62   :  { %389 = vmatprep.subr.bf16.mxu0 %v571_v0  ;;  %409 = vmatprep.subr.bf16.mxu1 %v571_v0 }
  0x65   :  { %390 = vmatpush3.bf16.msra.mxu0 %v434_v11  ;;  %410 = vmatpush3.bf16.msra.mxu1 %v443_v16 }
  0x66   :  { %391 = vmatprep.subr.bf16.mxu0 %v571_v0  ;;  %411 = vmatprep.subr.bf16.mxu1 %v571_v0 }
  0x69   :  { %392 = vmatpush3.bf16.msra.mxu0 %v435_v13  ;;  %412 = vmatpush3.bf16.msra.mxu1 %v444_v17 }
  0x6c   :  { %394 = vmatmul.mubr.bf16.vlgmr.msra.gmra.mrb[0].mxu0 %v436_v14 }
 0x13f   :  { %v193_v19 = vpop.f32.mrb[0].mxu0 }
 0x140   :  { %v194_v20 = vadd.f32 %v340_v18, %v193_v19  ;;  %v395_v21 = vpop.f32.mrb[1].mxu0 }
 0x141   :  { %v196_v22 = vpop.f32.mrb[2].mxu0 }
 0x142   :  { %v200_v23 = vmax.f32 %v194_v20, 0.0  ;;  %v197_v24 = vadd.f32 %v340_v18, %v196_v22  ;;  %v396_v25 = vpop.f32.mrb[3].mxu0 }
 0x144   :  { %v201_v28 = vmax.f32 %v197_v24, 0.0  ;;  %v204_v29 = vmul.f32 %v202_v26, %v200_v23 }
 0x146   :  { %v205_v30 = vmul.f32 %v203_v27, %v201_v28 }
 0x148   :  { %v206_v31 = vpack.c.bf16 %v205_v30, %v204_v29 }
 0x14a   :  { %414 = vmatmul.mubr.bf16.vlgmr.msra.gmra.mrb[0].mxu1 %v206_v31 }
 0x21d   :  { %v312_v33 = vpop.f32.mrb[0].mxu1 }
 0x21e   :  { %v313_v34 = vadd.f32 %v350_v32, %v312_v33  ;;  %v415_v35 = vpop.f32.mrb[1].mxu1 }
 0x21f   :  { %v315_v36 = vpop.f32.mrb[2].mxu1 }
 0x220   :  { %319 = vst [vmem:[#allocation10] sm:$0xff] %v313_v34  ;;  %v316_v37 = vadd.f32 %v350_v32, %v315_v36  ;;  %v416_v38 = vpop.f32.mrb[3].mxu1 }
 0x222   :  { %320 = vst [vmem:[#allocation10 + $0x8] sm:$0xff] %v316_v37 }
 0x223   :  { %544 = shalt.err (!%p541_p8)
}
 0x224   :  { %s545_s29 = scalar_lea.hbm %s703_s6, 256 }
 0x225   :  { %p546_p9 = scmp.ne.s32.totalorder %s703_s6, %s545_s29  ;;  %p549_p10 = scmp.lt.u32.totalorder %s545_s29, %s703_s6 }
 0x227   :  { %p551_p11 = pnand %p549_p10, %p546_p9 }
 0x229   :  { %554 = shalt.err (!%p551_p11)
}
 0x22a   :  { %332 = dma.vmem_to_hbm [thread:$0]  %s327_s26, 256, %s703_s6, [#allocation4], %s564_s7, %s564_s7, %s565_s8  }
 0x22b   :  { %561 = dma.done.wait [#allocation4], 256  }
 0x22c   :  { %562 = vsyncadd [#allocation4], 4294967040 }
 0x22d   :  { %336 = vsyncpa [#allocation3], 1 }
 0x22e   :  { %337 = vsyncpa [#allocation6], 1 }
 0x22f   :  { %338 = vsyncpa [#allocation9], 1 }
 0x230   :  { %339 = vsyncpa [#allocation4], 1 }

</bundles_post_ra>
